<compile_context>
chip_gen: v6e
topology: v6e:2x2x1
jax: 0.10.0
libtpu: 0.0.40
codegen_flags: <defaults>
</compile_context>

<pallas_src>
import jax
import jax.numpy as jnp
from jax.experimental import pallas as pl
from jax.experimental.pallas import tpu as pltpu


def _make_lambda_kernel(pad: int, n_blk: int, C: int, H: int, W: int):
    H_out, W_out = H // 2, W // 2
    HW_out = H_out * W_out

    def lambda_kernel(x_ref, o_ref):
        # x_ref: (n_blk, C, H*W)             lane-dense input tile
        # o_ref: (n_blk, C + 2*pad, HW_out)  lane-dense output tile
        x = x_ref[...]

        # (1) Drop odd W columns: even/odd de-interleave along the wide minor
        #     axis (stride-2 gather happens on a 128-lane-dense layout).
        xe = x.reshape(n_blk, C, (H * W) // 2, 2)[..., 0]           # (n_blk, C, H*W_out)

        # (2) Drop odd H rows: keep every other W_out-sized chunk of the minor.
        xs = xe.reshape(n_blk, C, H_out, 2, W_out)[:, :, :, 0, :]   # (n_blk, C, H_out, W_out)
        center = xs.reshape(n_blk, C, HW_out).astype(o_ref.dtype)

        # Single pass over the output tile: zero only the pad slabs, store the
        # center slab once (no full-tile zero followed by overwrite).
        if pad > 0:
            zeros = jnp.zeros((n_blk, pad, HW_out), dtype=o_ref.dtype)
            o_ref[:, :pad, :] = zeros
            o_ref[:, pad + C:, :] = zeros
        o_ref[:, pad:pad + C, :] = center

    return lambda_kernel


def _choose_batch_block(N: int, bytes_in_per_image: int, bytes_out_per_image: int,
                        tile_budget_bytes: int = 3 * 1024 * 1024) -> int:
    """Largest divisor of N whose (input + output) tile fits the budget.

    Prefers leaving at least 2 grid steps so both TensorCores get work on v7x.
    """
    per_image = bytes_in_per_image + bytes_out_per_image
    cap = max(1, tile_budget_bytes // per_image)
    divisors = [d for d in range(1, N + 1) if N % d == 0]
    fitting = [d for d in divisors if d <= cap] or [1]
    n_blk = max(fitting)
    if N // n_blk < 2:
        alt = [d for d in fitting if N // d >= 2]
        if alt:
            n_blk = max(alt)
    return n_blk


def lambda_layer(x: jax.Array, pad: int) -> jax.Array:
    """lambda x: F.pad(x[:, :, ::2, ::2], (0,0,0,0,pad,pad), 'constant', 0)."""
    N, C, H, W = x.shape
    assert H % 2 == 0 and W % 2 == 0, "even spatial dims expected"
    assert pad >= 0
    H_out, W_out = H // 2, W // 2
    HW_out = H_out * W_out
    C_out = C + 2 * pad

    itemsize = jnp.dtype(x.dtype).itemsize
    n_blk = _choose_batch_block(N, C * H * W * itemsize, C_out * HW_out * itemsize)
    grid = (N // n_blk,)

    # Free, contiguous reshape: present a lane-dense minor dim to the kernel.
    x_flat = x.reshape(N, C, H * W)

    kernel = _make_lambda_kernel(pad, n_blk, C, H, W)

    out_flat = pl.pallas_call(
        kernel,
        out_shape=jax.ShapeDtypeStruct((N, C_out, HW_out), x.dtype),
        grid_spec=pltpu.PrefetchScalarGridSpec(
            num_scalar_prefetch=0,
            grid=grid,
            in_specs=[pl.BlockSpec((n_blk, C, H * W), lambda i: (i, 0, 0))],
            out_specs=pl.BlockSpec((n_blk, C_out, HW_out), lambda i: (i, 0, 0)),
        ),
        compiler_params=pltpu.CompilerParams(
            dimension_semantics=("parallel",),
            vmem_limit_bytes=32 * 1024 * 1024,
        ),
    )(x_flat)

    # Free reshape back to NCHW.
    return out_flat.reshape(N, C_out, H_out, W_out)


if __name__ == "__main__":
    key = jax.random.PRNGKey(0)
    N, C, H, W = 2, 4, 16, 16
    planes = 8
    pad = planes // 4   # 2 zero channels on each side

    x = jax.random.normal(key, (N, C, H, W), dtype=jnp.float32)

    y = lambda_layer(x, pad)
    y = jax.block_until_ready(y)

    # Pure-JAX reference of the same lambda.
    y_ref = jnp.pad(x[:, :, ::2, ::2],
                    ((0, 0), (pad, pad), (0, 0), (0, 0)),
                    mode="constant", constant_values=0.0)

    assert y.shape == (N, C + 2 * pad, H // 2, W // 2), y.shape
    assert jnp.array_equal(y, y_ref), "mismatch vs reference"

    print("KERNEL_OK")
</pallas_src>

<mosaic_0001>
module attributes {stable_mosaic.version = 11 : i64} {
  func.func @lambda_kernel(%arg0: i32, %arg1: memref<1x4x256xf32, #tpu.memory_space<vmem>>, %arg2: memref<1x8x64xf32, #tpu.memory_space<vmem>>) attributes {dimension_semantics = [#tpu.dimension_semantics<parallel>], iteration_bounds = array<i64: 2>, scalar_prefetch = 0 : i64, scratch_operands = 0 : i64, tpu.core_type = #tpu.core_type<tc>, window_params = [{transform_indices = @transform_0, window_bounds = array<i64: 1, 4, 256>}, {transform_indices = @transform_1, window_bounds = array<i64: 1, 8, 64>}]} {
    %c0 = arith.constant 0 : index
    %c0_0 = arith.constant 0 : index
    %c0_1 = arith.constant 0 : index
    %0 = vector.load %arg1[%c0, %c0_0, %c0_1] : memref<1x4x256xf32, #tpu.memory_space<vmem>>, vector<1x4x256xf32>
    %1 = vector.shape_cast %0 : vector<1x4x256xf32> to vector<1x4x128x2xf32>
    %2 = vector.extract_strided_slice %1 {offsets = [0, 0, 0, 0], sizes = [1, 4, 128, 1], strides = [1, 1, 1, 1]} : vector<1x4x128x2xf32> to vector<1x4x128x1xf32>
    %3 = vector.shape_cast %2 : vector<1x4x128x1xf32> to vector<1x4x128xf32>
    %4 = vector.shape_cast %3 : vector<1x4x128xf32> to vector<1x4x8x2x8xf32>
    %5 = vector.extract_strided_slice %4 {offsets = [0, 0, 0, 0, 0], sizes = [1, 4, 8, 1, 8], strides = [1, 1, 1, 1, 1]} : vector<1x4x8x2x8xf32> to vector<1x4x8x1x8xf32>
    %6 = vector.shape_cast %5 : vector<1x4x8x1x8xf32> to vector<1x4x8x8xf32>
    %7 = vector.shape_cast %6 : vector<1x4x8x8xf32> to vector<1x4x64xf32>
    %cst = arith.constant 0.000000e+00 : f32
    %8 = vector.broadcast %cst : f32 to vector<1x2x64xf32>
    %c0_2 = arith.constant 0 : index
    %c0_3 = arith.constant 0 : index
    %c0_4 = arith.constant 0 : index
    %9 = vector.load %arg2[%c0_2, %c0_3, %c0_4] : memref<1x8x64xf32, #tpu.memory_space<vmem>>, vector<1x2x64xf32>
    tpu.vector_store %arg2[%c0_2, %c0_3, %c0_4], %8 {strides = array<i32>} : memref<1x8x64xf32, #tpu.memory_space<vmem>>, vector<1x2x64xf32>,
    %c0_5 = arith.constant 0 : index
    %c6 = arith.constant 6 : index
    %c0_6 = arith.constant 0 : index
    %10 = vector.load %arg2[%c0_5, %c6, %c0_6] : memref<1x8x64xf32, #tpu.memory_space<vmem>>, vector<1x2x64xf32>
    tpu.vector_store %arg2[%c0_5, %c6, %c0_6], %8 {strides = array<i32>} : memref<1x8x64xf32, #tpu.memory_space<vmem>>, vector<1x2x64xf32>,
    %c0_7 = arith.constant 0 : index
    %c2 = arith.constant 2 : index
    %c0_8 = arith.constant 0 : index
    %11 = vector.load %arg2[%c0_7, %c2, %c0_8] : memref<1x8x64xf32, #tpu.memory_space<vmem>>, vector<1x4x64xf32>
    tpu.vector_store %arg2[%c0_7, %c2, %c0_8], %7 {strides = array<i32>} : memref<1x8x64xf32, #tpu.memory_space<vmem>>, vector<1x4x64xf32>,
    return
  }
  func.func @transform_0(%arg0: i32) -> (i32, i32, i32) {
    %c0_i32 = arith.constant 0 : i32
    %c0_i32_0 = arith.constant 0 : i32
    %c0_i32_1 = arith.constant 0 : i32
    return %arg0, %c0_i32, %c0_i32_0 : i32, i32, i32
  }
  func.func @transform_1(%arg0: i32) -> (i32, i32, i32) {
    %c0_i32 = arith.constant 0 : i32
    %c0_i32_0 = arith.constant 0 : i32
    %c0_i32_1 = arith.constant 0 : i32
    return %arg0, %c0_i32, %c0_i32_0 : i32, i32, i32
  }
}

</mosaic_0001>

<bundles_post_ra>
// kernel: tpu_custom_call.1
= control target key start
LH: loop header
LB: loop body
LE: loop exit
PB: predicated region body
PF: predicated region fallthrough
CT: control target
= control target key end

     0   :  { %6 = vsyncpa [#allocation3], 0  ;;  %s2062_s0 = inlined_call_operand.hbm [shape: f32[2,4,256], index: 0, kind: input, shape index: {}]   ;;  %s2063_s1 = inlined_call_operand.hbm [shape: f32[2,8,64], index: 1, kind: output, shape index: {}]  }
   0x1   :  { %8 = vsyncpa [#allocation3 + $0x1], 0 }
   0x2   :  { %9 = vsyncpa [#allocation4], 0 }
   0x3   :  { %11 = vsyncpa [#allocation4 + $0x1], 0  ;;  %s1550_s6 = smov 0   ;;  %s1552_s7 = smov 0  }
   0x4   :  { %s1554_s8 = smov 0   ;;  %s1556_s9 = smov 0  }
   0x5 LB: > { %s1571_s10 = sadd.s32 4294967295, %s1501_s9   ;;  %s1296_s11 = sadd.s32 4294967294, %s1501_s9   ;;  %s1501_s9 = sphi %s1556_s9, %s2080_s9   ;;  %s1497_s8 = sphi %s1554_s8, %s2079_s8   ;;  %s1493_s7 = sphi %s1552_s7, %s2078_s7   ;;  %s1489_s6 = sphi %s1550_s6, %s2077_s6  }
   0x6   : > { %s1575_s12 = sadd.s32 1, %s1501_s9   ;;  %s24_s13 = sadd.s32 1, %s1497_s8 }
   0x7   : > { %s21_s14 = ssub.s32 %s1501_s9, %s1575_s12  ;;  %p31_p0 = scmp.ne.s32.totalorder %s1497_s8, %s1493_s7 }
   0x8   : > { %p22_p1 = scmp.eq.s32.totalorder %s21_s14, 0  ;;  %p32_p2 = scmp.eq.s32.totalorder %s1501_s9, 0 }
   0x9   : > { %p37_p3 = scmp.ne.s32.totalorder %s1493_s7, %s1489_s6  ;;  %p38_p4 = scmp.eq.s32.totalorder %s1571_s10, 0 }
   0xa   : > { %s1587_s15 = scalar_select %p22_p1, %s1497_s8, %s24_s13  }
   0xb   : > { %p1589_p5 = por %p32_p2, %p31_p0  ;;  %p1593_p6 = por %p38_p4, %p37_p3 }
   0xc   : > { %p61_p7 = scmp.eq.s32.totalorder %s1571_s10, 1  ;;  %p67_p8 = scmp.eq.s32.totalorder %s1296_s11, 1 }
   0xd   : > { %s2067_s17 = scalar_select %p1593_p6, 1, 0 }
   0xe   : > { %p1338_p10 = scmp.lt.s32.totalorder %s1501_s9, 2  ;;  %p1600_p11 = por %p61_p7, %p31_p0 }
   0xf   : > { %p1604_p12 = por %p67_p8, %p37_p3  ;;  %s87_s20 = sand.u32 1, %s1497_s8  }
  0x10   : > { %s2068_s18 = scalar_select %p1600_p11, 1, 0 }
  0x11   : > { %s2069_s19 = scalar_select %p1604_p12, 1, 0 }
  0x12   : > { %s1325_s21 = sshll.u32 %s1501_s9, 7  ;;  %s1299_s22 = sshll.u32 %s87_s20, 3 }
  0x13   : > { %s1613_s25 = scalar_lea.hbm %s2062_s0, %s1325_s21  ;;  %s91_s26 = scalar_lea.vmem [#allocation2], %s1299_s22 }
  0x14   : > { %s99_s27 = sshll.u32 %s91_s26, 4  ;;  %p1617_p13 = pnand %p1338_p10, %p1589_p5  ;;  %s1621_s27 = int_to_ptr.vmem [resolvable:$true] %s99_s27 }
  0x15   : > { %s88_s29 = scalar_lea.sflag [#allocation3], %s87_s20  ;;  %s1409_s30 = scalar_lea.hbm %s1613_s25, 128 }
  0x16   : > { %p1410_p2 = scmp.ne.s32.totalorder %s1613_s25, %s1409_s30  ;;  %p1411_p3 = pneg %p1617_p13 }
  0x17   : > { %s1414_s4 = scalar_lea.hbm %s2062_s0, 256  ;;  %p1415_p5 = scmp.lt.s32.totalorder %s1613_s25, %s2062_s0 }
  0x18   : > { %p1412_p4 = pnand %p1411_p3, %p1410_p2  ;;  %p1416_p8 = scmp.lt.s32.totalorder %s1414_s4, %s1409_s30 }
  0x1a   : > { %p1413_p7 = pneg %p1412_p4  ;;  %p1417_p10 = por %p1416_p8, %p1415_p5 }
  0x1c   : > { %p1418_p9 = pnand %p1417_p10, %p1413_p7 }
  0x1e   : > { %1421 = shalt.err (!%p1418_p9)
}
  0x1f   : > { %s1422_s13 = scalar_lea.vmem %s1621_s27, 128  ;;  %s1503_s14 = smov [#allocation2]  }
  0x20   : > { %p1423_p0 = scmp.ne.s32.totalorder %s1621_s27, %s1422_s13  ;;  %s1427_s16 = sshll.u32 %s1503_s14, 4  ;;  %s1428_s16 = int_to_ptr.vmem [resolvable:$false] %s1427_s16 }
  0x21   : > { %s1429_s20 = scalar_lea.vmem %s1428_s16, 256  ;;  %p1430_p4 = scmp.lt.s32.totalorder %s1621_s27, %s1428_s16 }
  0x22   : > { %p1425_p1 = pnand %p1423_p0, %p1411_p3  ;;  %p1431_p12 = scmp.lt.s32.totalorder %s1429_s20, %s1422_s13 }
  0x24   : > { %p1426_p2 = pneg %p1425_p1  ;;  %p1432_p11 = por %p1431_p12, %p1430_p4 }
  0x26   : > { %p1433_p6 = pnand %p1432_p11, %p1426_p2 }
  0x28   : > { %1436 = shalt.err (!%p1433_p6)
}
  0x29   : > { %1333 = dma.hbm_to_vmem [thread:$0]  (!%p1617_p13), %s1613_s25, 128, %s1621_s27, %s88_s29  }
  0x2a   : > { %p2071_p9 = scmp.lt.s32.totalorder %s1501_s9, 3  ;;  %p2072_p7 = scmp.ge.s32.totalorder %s1501_s9, 1 }
  0x2c   : > { %p105_p0 = pnand %p2072_p7, %p2071_p9 }
  0x2d   : > { %s1648_s21 = sand.u32 (!%p105_p0), 1, %s1493_s7   ;;  %p2073_p6 = scmp.ne.s32.totalorder (!%p105_p0), %s2067_s17, 0 }
  0x2e   : > { %108 = sbr.rel (%p105_p0) target bundleno = 436 (0x1b4), region = 24  ;;  %s1303_s22 = sshll.u32 (!%p105_p0), %s1648_s21, 3 }
  0x2f   : > { %s111_s23 = scalar_lea.sflag (!%p105_p0), [#allocation3], %s1648_s21  ;;  %s114_s24 = scalar_lea.vmem (!%p105_p0), [#allocation2], %s1303_s22 }
  0x33   : > { %1480 = dma.done.wait (%p2073_p6), %s111_s23, 128  }
  0x34   : > { %1482 = vsyncadd (%p2073_p6), %s111_s23, 4294967168  ;;  %vm836_vm0 = vcmask 517120   ;;  %s1656_s25 = scalar_lea.vmem [#allocation5], %s1303_s22  ;;  %v1504_v0 = vmov 0.0   ;;  %v1660_v1 = vld [vmem:[%s114_s24] sm:$0xff]  ;;  %s1505_s26 = smov 122   ;;  %v296_v5 = vlaneseq }
  0x35   : > { %837 = vst.msk [vmem:[%s1656_s25] sm:$0x3] %vm836_vm0, %v1504_v0  ;;  %838 = vst.msk [vmem:[%s1656_s25 + $0x6] sm:$0x3] %vm836_vm0, %v1504_v0  ;;  %145 = vrot.lane.b32.xlu1 %v1660_v1, %s1505_s26  ;;  %s1506_s27 = smov 126   ;;  %s1507_s28 = smov 120  }
  0x36   : > { %137 = vrot.lane.b32.xlu0 %v1660_v1, %s1506_s27  ;;  %s1508_s17 = smov 124   ;;  %s1509_s29 = smov 116   ;;  %v1511_v2 = vmov 0   ;;  %v1537_v3 = vmov 1983009808   ;;  %v1694_v11 = vshrl.u32 %v296_v5, 7 }
  0x37   : > { %s1510_s30 = smov 118   ;;  %1407 = vset.pattern.permute.xlu1 %v1511_v2  ;;  %1408 = vset.pattern.permute.xlu0 %v1511_v2  ;;  %s1512_s2 = smov 96   ;;  %v294_v4 = vunpack.c.l.s4 %v1537_v3  ;;  %v135_v12 = vrot.slane %v1660_v1, 4  ;;  %v1538_v15 = vmov 1934713408   ;;  %vm1042_vm1 = vcmask 130112  }
  0x38   : > { %s1513_s3 = smov 114   ;;  %s1514_s4 = smov 92   ;;  %v311_v16 = vunpack.c.l.s4 %v1538_v15  ;;  %vm1049_vm2 = vcmask 195712   ;;  %vm1056_vm3 = vcmask 261312   ;;  %vm1063_vm4 = vcmask 326912  }
  0x39   : > { %149 = vrot.lane.b32.xlu1 %v1660_v1, %s1507_s28  ;;  %s1515_s5 = smov 94   ;;  %s1516_s11 = smov 88   ;;  %v295_v10 = vunpack.c.0.s8 %v294_v4  ;;  %vm1070_vm5 = vcmask 392512   ;;  %vm1077_vm6 = vcmask 458112   ;;  %vm1084_vm7 = vcmask 523712  }
  0x3a   : > { %141 = vrot.lane.b32.xlu0 %v1660_v1, %s1508_s17  ;;  %s1517_s13 = smov 90   ;;  %s1518_s14 = smov 84   ;;  %v312_v25 = vunpack.c.0.s8 %v311_v16  ;;  %vm1203_vm8 = vcmask 1041409   ;;  %vm1205_vm9 = vcmask 1042434   ;;  %vm1207_vm10 = vcmask 1043459  }
  0x3b   : > { %s1519_s16 = smov 86   ;;  %s1520_s20 = smov 64   ;;  %v1698_v19 = vsub.s32 %v295_v10, %v1694_v11  ;;  %vm1210_vm11 = vcmask 519168  }
  0x3c   : > { %s1521_s22 = smov 82   ;;  %s1522_s23 = smov 60   ;;  %v1713_v36 = vsub.s32 %v312_v25, %v1694_v11 }
  0x3d   : > { %157 = vrot.lane.b32.xlu1 %v1660_v1, %s1509_s29  ;;  %s1523_s24 = smov 62   ;;  %s1524_s26 = smov 56  }
  0x3e   : > { %153 = vrot.lane.b32.xlu0 %v1660_v1, %s1510_s30  ;;  %s1525_s27 = smov 58   ;;  %s1526_s28 = smov 52  }
  0x3f   : > { %s1527_s17 = smov 54   ;;  %s1528_s29 = smov 32  }
  0x40   : > { %s1529_s30 = smov 50   ;;  %p2074_p12 = scmp.ne.s32.totalorder %s2068_s18, 0 }
  0x41   : > { %165 = vrot.lane.b32.xlu1 %v1660_v1, %s1512_s2  ;;  %s1530_s2 = smov 28  }
  0x42   : > { %161 = vrot.lane.b32.xlu0 %v1660_v1, %s1513_s3  ;;  %s1531_s3 = smov 30  }
  0x45   : > { %173 = vrot.lane.b32.xlu1 %v1660_v1, %s1514_s4  ;;  %s1532_s4 = smov 24  }
  0x46   : > { %169 = vrot.lane.b32.xlu0 %v1660_v1, %s1515_s5  ;;  %s1533_s5 = smov 26  }
  0x49   : > { %181 = vrot.lane.b32.xlu1 %v1660_v1, %s1516_s11  ;;  %s1534_s11 = smov 20  }
  0x4a   : > { %177 = vrot.lane.b32.xlu0 %v1660_v1, %s1517_s13  ;;  %s1535_s13 = smov 22  }
  0x4d   : > { %189 = vrot.lane.b32.xlu1 %v1660_v1, %s1518_s14  ;;  %s1536_s14 = smov 18  }
  0x4e   : > { %185 = vrot.lane.b32.xlu0 %v1660_v1, %s1519_s16  ;;  %s1322_s16 = sshll.u32 %s1571_s10, 7  ;;  %s1213_s10 = scalar_lea.sflag [#allocation4], %s1648_s21 }
  0x51   : > { %197 = vrot.lane.b32.xlu1 %v1660_v1, %s1520_s20  ;;  %s1226_s20 = sshll.u32 %s1656_s25, 4  ;;  %s1227_s20 = int_to_ptr.vmem [resolvable:$true] %s1226_s20 }
  0x52   : > { %193 = vrot.lane.b32.xlu0 %v1660_v1, %s1521_s22 }
  0x55   : > { %205 = vrot.lane.b32.xlu1 %v1660_v1, %s1522_s23 }
  0x56   : > { %201 = vrot.lane.b32.xlu0 %v1660_v1, %s1523_s24  ;;  %s2024_s24 = scalar_lea.hbm %s2063_s1, %s1322_s16 }
  0x59   : > { %213 = vrot.lane.b32.xlu1 %v1660_v1, %s1524_s26  ;;  %s1437_s26 = scalar_lea.vmem %s1227_s20, 128 }
  0x5a   : > { %209 = vrot.lane.b32.xlu0 %v1660_v1, %s1525_s27  ;;  %p1438_p11 = scmp.ne.s32.totalorder %s1227_s20, %s1437_s26  ;;  %s1539_s27 = smov [#allocation5]  }
  0x5c   : > { %p1439_p13 = pnand %p1438_p11, %p2074_p12 }
  0x5d   : > { %221 = vrot.lane.b32.xlu1 %v1660_v1, %s1526_s28  ;;  %s1441_s28 = sshll.u32 %s1539_s27, 4  ;;  %s1442_s28 = int_to_ptr.vmem [resolvable:$false] %s1441_s28 }
  0x5e   : > { %217 = vrot.lane.b32.xlu0 %v1660_v1, %s1527_s17  ;;  %p1440_p1 = pneg %p1439_p13  ;;  %s1443_s17 = scalar_lea.vmem %s1442_s28, 256 }
  0x5f   : > { %p1444_p3 = scmp.lt.s32.totalorder %s1227_s20, %s1442_s28  ;;  %p1445_p5 = scmp.lt.s32.totalorder %s1443_s17, %s1437_s26 }
  0x61   : > { %229 = vrot.lane.b32.xlu1 %v1660_v1, %s1528_s29  ;;  %p1446_p8 = por %p1445_p5, %p1444_p3 }
  0x62   : > { %225 = vrot.lane.b32.xlu0 %v1660_v1, %s1529_s30 }
  0x63   : > { %p1447_p10 = pnand %p1446_p8, %p1440_p1 }
  0x65   : > { %237 = vrot.lane.b32.xlu1 %v1660_v1, %s1530_s2 }
  0x66   : > { %233 = vrot.lane.b32.xlu0 %v1660_v1, %s1531_s3 }
  0x69   : > { %245 = vrot.lane.b32.xlu1 %v1660_v1, %s1532_s4 }
  0x6a   : > { %241 = vrot.lane.b32.xlu0 %v1660_v1, %s1533_s5 }
  0x6d   : > { %253 = vrot.lane.b32.xlu1 %v1660_v1, %s1534_s11 }
  0x6e   : > { %249 = vrot.lane.b32.xlu0 %v1660_v1, %s1535_s13 }
  0x72   : > { %257 = vrot.lane.b32.xlu0 %v1660_v1, %s1536_s14 }
  0xa7   : > { %v146_v6 = vpop.permute.xlu1 %145 }
  0xa8   : > { %v138_v7 = vpop.permute.xlu0 %137  ;;  %v147_v8 = vrot.slane %v146_v6, 4 }
  0xa9   : > { %v139_v9 = vrot.slane %v138_v7, 4  ;;  %v300_v29 = vcombine.low %v138_v7, %v146_v6 }
  0xab   : > { %v150_v13 = vpop.permute.xlu1 %149  ;;  %v572_v17 = vcombine.low %v139_v9, %v147_v8  ;;  %v1716_v40 = vrot.slane %v300_v29, %v1698_v19 }
  0xac   : > { %v142_v14 = vpop.permute.xlu0 %141  ;;  %v151_v21 = vrot.slane %v150_v13, 4 }
  0xad   : > { %v143_v18 = vrot.slane %v142_v14, 4  ;;  %v292_v22 = vcombine.low %v1660_v1, %v142_v14  ;;  %v1702_v26 = vrot.slane %v572_v17, %v1698_v19 }
  0xaf   : > { %v564_v20 = vcombine.low %v135_v12, %v143_v18  ;;  %v158_v23 = vpop.permute.xlu1 %157  ;;  %v1710_v32 = vrot.slane %v292_v22, %v1698_v19 }
  0xb0   : > { %v154_v24 = vpop.permute.xlu0 %153  ;;  %v159_v28 = vrot.slane %v158_v23, 4  ;;  %v326_v31 = vcombine.low %v150_v13, %v158_v23 }
  0xb1   : > { %v1705_v27 = vrot.slane %v564_v20, %v1698_v19  ;;  %v155_v37 = vrot.slane %v154_v24, 4  ;;  %v308_v45 = vcombine.low %v1710_v32, %v1716_v40 }
  0xb2   : > { %v598_v33 = vcombine.low %v151_v21, %v159_v28  ;;  %v1722_v42 = vrot.slane %v326_v31, %v1698_v19 }
  0xb3   : > { %v581_v30 = vcombine.high %v1705_v27, %v1702_v26  ;;  %v166_v34 = vpop.permute.xlu1 %165  ;;  %v316_v57 = vrot.slane %v308_v45, %v1713_v36 }
  0xb4   : > { %v162_v35 = vpop.permute.xlu0 %161  ;;  %v1730_v46 = vrot.slane %v598_v33, %v1698_v19  ;;  %v167_v49 = vrot.slane %v166_v34, 4 }
  0xb5   : > { %v163_v38 = vrot.slane %v162_v35, 4  ;;  %v334_v39 = vcombine.low %v154_v24, %v162_v35  ;;  %v1719_v41 = vrot.slane %v581_v30, %v1713_v36 }
  0xb7   : > { %v1725_v43 = vrot.slane %v334_v39, %v1698_v19  ;;  %v606_v44 = vcombine.low %v155_v37, %v163_v38  ;;  %v174_v47 = vpop.permute.xlu1 %173 }
  0xb8   : > { %v170_v48 = vpop.permute.xlu0 %169  ;;  %v175_v52 = vrot.slane %v174_v47, 4  ;;  %v360_v8 = vcombine.low %v166_v34, %v174_v47 }
  0xb9   : > { %v342_v50 = vcombine.low %v1722_v42, %v1725_v43  ;;  %v1735_v51 = vrot.slane %v606_v44, %v1698_v19  ;;  %v171_v59 = vrot.slane %v170_v48, 4 }
  0xba   : > { %v632_v58 = vcombine.low %v167_v49, %v175_v52  ;;  %v1756_v23 = vrot.slane %v360_v8, %v1698_v19 }
  0xbb   : > { %v615_v53 = vcombine.high %v1730_v46, %v1735_v51  ;;  %v350_v54 = vrot.slane %v342_v50, %v1713_v36  ;;  %v182_v55 = vpop.permute.xlu1 %181 }
  0xbc   : > { %v178_v56 = vpop.permute.xlu0 %177  ;;  %v639_v3 = vrot.slane %v632_v58, %v1698_v19  ;;  %v183_v4 = vrot.slane %v182_v55, 4 }
  0xbd   : > { %v179_v60 = vrot.slane %v178_v56, 4  ;;  %v903_v61 = vcombine.low %v316_v57, %v350_v54  ;;  %v1742_v63 = vrot.slane %v615_v53, %v1713_v36  ;;  %v368_v0 = vcombine.low %v170_v48, %v178_v56 }
  0xbf   : > { %v640_v62 = vcombine.low %v171_v59, %v179_v60  ;;  %936 = vperm.xlu1 %1407, %v903_v61   ;;  %v190_v1 = vpop.permute.xlu1 %189  ;;  %v923_v9 = vcombine.low %v1719_v41, %v1742_v63  ;;  %v1317_v10 = vcombine.high %v1719_v41, %v1742_v63  ;;  %v1751_v15 = vrot.slane %v368_v0, %v1698_v19 }
  0xc0   : > { %v186_v2 = vpop.permute.xlu0 %185  ;;  %v191_v7 = vrot.slane %v190_v1, 4  ;;  %v394_v14 = vcombine.low %v182_v55, %v190_v1  ;;  %v1305_v60 = vcombine.high %v316_v57, %v350_v54 }
  0xc1   : > { %v647_v6 = vrot.slane %v640_v62, %v1698_v19  ;;  %v187_v20 = vrot.slane %v186_v2, 4  ;;  %v376_v31 = vcombine.low %v1756_v23, %v1751_v15 }
  0xc2   : > { %v666_v18 = vcombine.low %v183_v4, %v191_v7  ;;  %v1765_v28 = vrot.slane %v394_v14, %v1698_v19  ;;  %v343_v7 = vcombine.high %v1722_v42, %v1725_v43  ;;  %v377_v42 = vcombine.high %v1756_v23, %v1751_v15 }
  0xc3   : > { %v648_v12 = vcombine.low %v639_v3, %v647_v6  ;;  %v649_v13 = vcombine.high %v639_v3, %v647_v6  ;;  %v1753_v16 = vpop.permute.xlu1 %197  ;;  %v1788_v49 = vrot.slane %v376_v31, %v1713_v36 }
  0xc4   : > { %v194_v17 = vpop.permute.xlu0 %193  ;;  %v673_v35 = vrot.slane %v666_v18, %v1698_v19  ;;  %v309_v18 = vcombine.high %v1710_v32, %v1716_v40  ;;  %v1830_v31 = vrot.slane %v343_v7, %v1713_v36 }
  0xc5   : > { %v195_v21 = vrot.slane %v194_v17, 4  ;;  %v402_v22 = vcombine.low %v186_v2, %v194_v17  ;;  %v1759_v24 = vrot.slane %v649_v13, %v1713_v36  ;;  %v1762_v25 = vrot.slane %v648_v12, %v1713_v36 }
  0xc6   : > { %v1836_v32 = vrot.slane %v309_v18, %v1713_v36  ;;  %v1843_v18 = vrot.slane %v377_v42, %v1713_v36 }
  0xc7   : > { %v1768_v29 = vrot.slane %v402_v22, %v1698_v19  ;;  %v674_v30 = vcombine.low %v187_v20, %v195_v21  ;;  %v1772_v33 = vpop.permute.xlu1 %205 }
  0xc8   : > { %v1774_v34 = vpop.permute.xlu0 %201  ;;  %v428_v59 = vcombine.low %v1753_v16, %v1772_v33  ;;  %v919_v15 = vcombine.low %v1836_v32, %v1830_v31 }
  0xc9   : > { %v410_v37 = vcombine.low %v1765_v28, %v1768_v29  ;;  %v681_v38 = vrot.slane %v674_v30, %v1698_v19  ;;  %v411_v40 = vcombine.high %v1765_v28, %v1768_v29 }
  0xca   : > { %v435_v6 = vrot.slane %v428_v59, %v1698_v19 }
  0xcb   : > { %v682_v39 = vcombine.low %v673_v35, %v681_v38  ;;  %v683_v44 = vcombine.high %v673_v35, %v681_v38  ;;  %v1781_v45 = vrot.slane %v410_v37, %v1713_v36  ;;  %v1783_v47 = vpop.permute.xlu1 %213 }
  0xcc   : > { %v1785_v48 = vpop.permute.xlu0 %209 }
  0xcd   : > { %v904_v50 = vcombine.low %v1788_v49, %v1781_v45  ;;  %v1793_v52 = vrot.slane %v683_v44, %v1713_v36  ;;  %v1796_v53 = vrot.slane %v682_v39, %v1713_v36  ;;  %v436_v55 = vcombine.low %v1774_v34, %v1785_v48 }
  0xcf   : > { %939 = vperm.xlu0 %1408, %v904_v50   ;;  %v1800_v56 = vpop.permute.xlu1 %221  ;;  %v924_v61 = vcombine.low %v1759_v24, %v1793_v52  ;;  %v908_v62 = vcombine.low %v1762_v25, %v1796_v53  ;;  %v443_v1 = vrot.slane %v436_v55, %v1698_v19  ;;  %v1318_v4 = vcombine.high %v1759_v24, %v1793_v52 }
  0xd0   : > { %v1802_v58 = vpop.permute.xlu0 %217  ;;  %v462_v0 = vcombine.low %v1783_v47, %v1800_v56  ;;  %v1310_v54 = vcombine.high %v1762_v25, %v1796_v53 }
  0xd1   : > { %v444_v13 = vcombine.low %v435_v6, %v443_v1  ;;  %v445_v23 = vcombine.high %v435_v6, %v443_v1 }
  0xd2   : > { %v469_v8 = vrot.slane %v462_v0, %v1698_v19 }
  0xd3   : > { %960 = vperm.xlu0 %1408, %v1305_v60   ;;  %v230_v2 = vpop.permute.xlu1 %229  ;;  %v452_v37 = vrot.slane %v444_v13, %v1713_v36 }
  0xd4   : > { %v1813_v3 = vpop.permute.xlu0 %225  ;;  %v231_v20 = vrot.slane %v230_v2, 4 }
  0xd5   : > { %v470_v57 = vcombine.low %v1802_v58, %v1813_v3 }
  0xd7   : > { %v477_v12 = vrot.slane %v470_v57, %v1698_v19  ;;  %v238_v14 = vpop.permute.xlu1 %237 }
  0xd8   : > { %v234_v17 = vpop.permute.xlu0 %233  ;;  %v239_v22 = vrot.slane %v238_v14, 4  ;;  %v496_v57 = vcombine.low %v230_v2, %v238_v14  ;;  %v1851_v2 = vrot.slane %v411_v40, %v1713_v36  ;;  %v223_v40 = vrot.slane %v1800_v56, 4 }
  0xd9   : > { %v478_v21 = vcombine.low %v469_v8, %v477_v12  ;;  %v235_v39 = vrot.slane %v234_v17, 4  ;;  %v479_v50 = vcombine.high %v469_v8, %v477_v12  ;;  %v215_v12 = vrot.slane %v1783_v47, 4 }
  0xda   : > { %v768_v38 = vcombine.low %v231_v20, %v239_v22  ;;  %v503_v42 = vrot.slane %v496_v57, %v1698_v19  ;;  %v459_v47 = vrot.slane %v445_v23, %v1713_v36  ;;  %v207_v23 = vrot.slane %v1772_v33, 4 }
  0xdb   : > { %v486_v30 = vrot.slane %v478_v21, %v1713_v36  ;;  %v246_v43 = vpop.permute.xlu1 %245  ;;  %v493_v1 = vrot.slane %v479_v50, %v1713_v36  ;;  %v219_v50 = vrot.slane %v1802_v58, 4  ;;  %v203_v57 = vrot.slane %v1774_v34, 4 }
  0xdc   : > { %v242_v35 = vpop.permute.xlu0 %241  ;;  %v775_v20 = vrot.slane %v768_v38, %v1698_v19  ;;  %v247_v28 = vrot.slane %v246_v43, 4  ;;  %v1314_v56 = vcombine.high %v1843_v18, %v1851_v2 }
  0xdd   : > { %v243_v44 = vrot.slane %v242_v35, 4  ;;  %v1307_v55 = vcombine.high %v452_v37, %v486_v30  ;;  %v905_v59 = vcombine.low %v452_v37, %v486_v30  ;;  %v504_v60 = vcombine.low %v234_v17, %v242_v35 }
  0xde   : > { %v211_v17 = vrot.slane %v1785_v48, 4  ;;  %v227_v30 = vrot.slane %v1813_v3, 4 }
  0xdf   : > { %v776_v0 = vcombine.low %v235_v39, %v243_v44  ;;  %966 = vperm.xlu0 %1408, %v1307_v55   ;;  %942 = vperm.xlu1 %1407, %v905_v59   ;;  %v254_v7 = vpop.permute.xlu1 %253  ;;  %v511_v6 = vrot.slane %v504_v60, %v1698_v19 }
  0xe0   : > { %v250_v13 = vpop.permute.xlu0 %249  ;;  %v255_v8 = vrot.slane %v254_v7, 4  ;;  %v530_v22 = vcombine.low %v246_v43, %v254_v7  ;;  %v921_v43 = vcombine.low %v459_v47, %v493_v1  ;;  %v742_v58 = vcombine.low %v219_v50, %v227_v30 }
  0xe1   : > { %v783_v29 = vrot.slane %v776_v0, %v1698_v19  ;;  %v251_v35 = vrot.slane %v250_v13, 4  ;;  %v512_v55 = vcombine.low %v503_v42, %v511_v6  ;;  %v1306_v50 = vcombine.high %v1788_v49, %v1781_v45 }
  0xe2   : > { %v802_v48 = vcombine.low %v247_v28, %v255_v8  ;;  %v537_v59 = vrot.slane %v530_v22, %v1698_v19  ;;  %v708_v28 = vcombine.low %v203_v57, %v211_v17  ;;  %v513_v8 = vcombine.high %v503_v42, %v511_v6 }
  0xe3   : > { %v784_v14 = vcombine.low %v775_v20, %v783_v29  ;;  %v785_v21 = vcombine.high %v775_v20, %v783_v29  ;;  %984 = vperm.xlu0 %1408, %v919_v15   ;;  %v199_v15 = vrot.slane %v1753_v16, 4  ;;  %v734_v29 = vcombine.low %v215_v12, %v223_v40 }
  0xe4   : > { %v258_v37 = vpop.permute.xlu0 %257  ;;  %v809_v7 = vrot.slane %v802_v48, %v1698_v19  ;;  %v520_v33 = vrot.slane %v512_v55, %v1713_v36  ;;  %v614_v22 = vcombine.low %v1730_v46, %v1735_v51  ;;  %v1315_v48 = vcombine.high %v459_v47, %v493_v1 }
  0xe5   : > { %v259_v38 = vrot.slane %v258_v37, 4  ;;  %v538_v39 = vcombine.low %v250_v13, %v258_v37  ;;  %v1858_v44 = vrot.slane %v784_v14, %v1713_v36  ;;  %v1863_v3 = vrot.slane %v785_v21, %v1713_v36 }
  0xe6   : > { %v700_v30 = vcombine.low %v199_v15, %v207_v23  ;;  %v580_v42 = vcombine.low %v1705_v27, %v1702_v26  ;;  %v527_v46 = vrot.slane %v513_v8, %v1713_v36  ;;  %v622_v55 = vrot.slane %v614_v22, %v1713_v36 }
  0xe7   : > { %v545_v60 = vrot.slane %v538_v39, %v1698_v19  ;;  %v810_v0 = vcombine.low %v251_v35, %v259_v38  ;;  %990 = vperm.xlu0 %1408, %v921_v43   ;;  %v749_v35 = vrot.slane %v742_v58, %v1698_v19  ;;  %v715_v38 = vrot.slane %v708_v28, %v1698_v19 }
  0xe8   : > { %v741_v39 = vrot.slane %v734_v29, %v1698_v19  ;;  %v707_v26 = vrot.slane %v700_v30, %v1698_v19  ;;  %v1313_v49 = vcombine.high %v1836_v32, %v1830_v31 }
  0xe9   : > { %v546_v13 = vcombine.low %v537_v59, %v545_v60  ;;  %v817_v20 = vrot.slane %v810_v0, %v1698_v19  ;;  %v547_v14 = vcombine.high %v537_v59, %v545_v60  ;;  %v588_v60 = vrot.slane %v580_v42, %v1713_v36 }
  0xea   : > { %v750_v27 = vcombine.low %v741_v39, %v749_v35  ;;  %v716_v59 = vcombine.low %v707_v26, %v715_v38  ;;  %v920_v19 = vcombine.low %v1843_v18, %v1851_v2  ;;  %v717_v18 = vcombine.high %v707_v26, %v715_v38 }
  0xeb   : > { %v818_v21 = vcombine.low %v809_v7, %v817_v20  ;;  %v819_v16 = vcombine.high %v809_v7, %v817_v20  ;;  %v554_v34 = vrot.slane %v546_v13, %v1713_v36  ;;  %1011 = vperm.xlu0 %1408, %v1314_v56   ;;  %v561_v17 = vrot.slane %v547_v14, %v1713_v36 }
  0xec   : > { %v758_v15 = vrot.slane %v750_v27, %v1713_v36  ;;  %v1309_v23 = vcombine.high %v588_v60, %v622_v55  ;;  %v751_v56 = vcombine.high %v741_v39, %v749_v35  ;;  %v731_v31 = vrot.slane %v717_v18, %v1713_v36 }
  0xed   : > { %v906_v37 = vcombine.low %v520_v33, %v554_v34  ;;  %v826_v12 = vrot.slane %v818_v21, %v1713_v36  ;;  %v833_v6 = vrot.slane %v819_v16, %v1713_v36  ;;  %v1316_v43 = vcombine.high %v527_v46, %v561_v17 }
  0xee   : > { %v1308_v0 = vcombine.high %v520_v33, %v554_v34  ;;  %v922_v57 = vcombine.low %v527_v46, %v561_v17  ;;  %v765_v2 = vrot.slane %v751_v56, %v1713_v36  ;;  %v1032_v16 = vand.u32 127, %v296_v5 }
  0xef   : > { %945 = vperm.xlu1 %1407, %v906_v37   ;;  %1014 = vperm.xlu0 %1408, %v1315_v48   ;;  %v1312_v51 = vcombine.high %v1858_v44, %v826_v12  ;;  %v910_v1 = vcombine.low %v1858_v44, %v826_v12  ;;  %v926_v47 = vcombine.low %v1863_v3, %v833_v6 }
  0xf0   : > { %v1320_v40 = vcombine.high %v1863_v3, %v833_v6  ;;  %v907_v44 = vcombine.low %v588_v60, %v622_v55  ;;  %v724_v3 = vrot.slane %v716_v59, %v1713_v36  ;;  %v1319_v32 = vcombine.high %v731_v31, %v765_v2 }
  0xf1   : > { %v925_v24 = vcombine.low %v731_v31, %v765_v2  ;;  %v1037_v34 = vadd.s32 4294967288, %v1032_v16  ;;  %v1044_v22 = vadd.s32 4294967280, %v1032_v16  ;;  %v1051_v37 = vadd.s32 4294967272, %v1032_v16 }
  0xf2   : > { %v909_v45 = vcombine.low %v724_v3, %v758_v15  ;;  %v1035_v6 = vsub.s32 %v1032_v16, %v1694_v11  ;;  %v1058_v42 = vadd.s32 4294967264, %v1032_v16  ;;  %v1072_v38 = vadd.s32 4294967248, %v1032_v16 }
  0xf3   : > { %963 = vperm.xlu1 %1407, %v1306_v50   ;;  %1017 = vperm.xlu0 %1408, %v1316_v43   ;;  %v1040_v35 = vsub.s32 %v1037_v34, %v1694_v11  ;;  %v1047_v17 = vsub.s32 %v1044_v22, %v1694_v11  ;;  %v1065_v39 = vadd.s32 4294967256, %v1032_v16  ;;  %v1054_v46 = vsub.s32 %v1051_v37, %v1694_v11 }
  0xf4   : > { %v1061_v26 = vsub.s32 %v1058_v42, %v1694_v11  ;;  %v1961_v59 = vsub.s32 %v1072_v38, %v1694_v11 }
  0xf5   : > { %v1068_v60 = vsub.s32 %v1065_v39, %v1694_v11 }
  0xf7   : > { %969 = vperm.xlu1 %1407, %v1308_v0   ;;  %948 = vperm.xlu0 %1408, %v907_v44  }
  0xfb   : > { %987 = vperm.xlu1 %1407, %v920_v19   ;;  %954 = vperm.xlu0 %1408, %v909_v45  }
  0xff   : > { %1008 = vperm.xlu1 %1407, %v1313_v49   ;;  %972 = vperm.xlu0 %1408, %v1309_v23  }
 0x103   : > { %993 = vperm.xlu1 %1407, %v922_v57   ;;  %999 = vperm.xlu0 %1408, %v924_v61   ;;  %v1311_v61 = vcombine.high %v724_v3, %v758_v15 }
 0x107   : > { %951 = vperm.xlu1 %1407, %v908_v62   ;;  %981 = vperm.xlu0 %1408, %v1312_v51  }
 0x10b   : > { %957 = vperm.xlu1 %1407, %v910_v1   ;;  %1023 = vperm.xlu0 %1408, %v1318_v4   ;;  %v1079_v1 = vadd.s32 4294967240, %v1032_v16 }
 0x10d   : > { %v1971_v23 = vsub.s32 %v1079_v1, %v1694_v11 }
 0x10f   : > { %975 = vperm.xlu1 %1407, %v1310_v54   ;;  %1026 = vperm.xlu0 %1408, %v1319_v32  }
 0x113   : > { %996 = vperm.xlu1 %1407, %v923_v9  }
 0x117   : > { %978 = vperm.xlu1 %1407, %v1311_v61  }
 0x11b   : > { %1020 = vperm.xlu1 %1407, %v1317_v10  }
 0x11f   : > { %1002 = vperm.xlu1 %1407, %v925_v24  }
 0x123   : > { %1005 = vperm.xlu1 %1407, %v926_v47  }
 0x127   : > { %1029 = vperm.xlu1 %1407, %v1320_v40  }
 0x13a   : > { %v937_v62 = vpop.permute.xlu1 %936 }
 0x13b   : > { %v1036_v40 = vrot.slane %v937_v62, %v1035_v6 }
 0x14a   : > { %v940_v36 = vpop.permute.xlu0 %939 }
 0x14b   : > { %v1041_v5 = vrot.slane %v940_v36, %v1040_v35 }
 0x14d   : > { %v1043_v0 = vsel %vm1042_vm1, %v1041_v5, %v1036_v40 }
 0x14e   : > { %v1922_v52 = vpop.permute.xlu0 %960 }
 0x14f   : > { %v1089_v44 = vrot.slane %v1922_v52, %v1035_v6 }
 0x15a   : > { %v1924_v25 = vpop.permute.xlu0 %966  ;;  %v943_v9 = vpop.permute.xlu1 %942 }
 0x15b   : > { %v1048_v51 = vrot.slane %v943_v9, %v1047_v17  ;;  %v1098_v45 = vrot.slane %v1924_v25, %v1047_v17 }
 0x15d   : > { %v1050_v19 = vsel %vm1049_vm2, %v1048_v51, %v1043_v0 }
 0x15e   : > { %v1926_v53 = vpop.permute.xlu0 %984 }
 0x15f   : > { %v1128_v49 = vrot.slane %v1926_v53, %v1035_v6 }
 0x162   : > { %v1928_v4 = vpop.permute.xlu0 %990 }
 0x163   : > { %v1137_v11 = vrot.slane %v1928_v4, %v1047_v17 }
 0x166   : > { %v1012_v54 = vpop.permute.xlu0 %1011 }
 0x167   : > { %v1171_v15 = vrot.slane %v1012_v54, %v1040_v35 }
 0x16a   : > { %v1930_v58 = vpop.permute.xlu1 %945  ;;  %v1932_v63 = vpop.permute.xlu0 %1014 }
 0x16b   : > { %v1055_v3 = vrot.slane %v1930_v58, %v1054_v46  ;;  %v1176_v56 = vrot.slane %v1932_v63, %v1047_v17 }
 0x16d   : > { %v1057_v52 = vsel %vm1056_vm3, %v1055_v3, %v1050_v19 }
 0x16e   : > { %v964_v41 = vpop.permute.xlu1 %963  ;;  %v1936_v7 = vpop.permute.xlu0 %1017 }
 0x16f   : > { %v1093_v50 = vrot.slane %v964_v41, %v1040_v35 }
 0x171   : > { %v1094_v18 = vsel %vm1042_vm1, %v1093_v50, %v1089_v44 }
 0x172   : > { %v1934_v10 = vpop.permute.xlu1 %969  ;;  %v1938_v28 = vpop.permute.xlu0 %948  ;;  %v1099_v9 = vsel %vm1049_vm2, %v1098_v45, %v1094_v18 }
 0x173   : > { %v1103_v2 = vrot.slane %v1934_v10, %v1054_v46  ;;  %v1062_v32 = vrot.slane %v1938_v28, %v1061_v26  ;;  %v1181_v10 = vrot.slane %v1936_v7, %v1054_v46 }
 0x175   : > { %v1064_v28 = vsel %vm1063_vm4, %v1062_v32, %v1057_v52 }
 0x176   : > { %v988_v13 = vpop.permute.xlu1 %987  ;;  %v1942_v8 = vpop.permute.xlu0 %954 }
 0x177   : > { %v1132_v55 = vrot.slane %v988_v13, %v1040_v35  ;;  %v1104_v13 = vsel %vm1056_vm3, %v1103_v2, %v1099_v9 }
 0x179   : > { %v1133_v61 = vsel %vm1042_vm1, %v1132_v55, %v1128_v49 }
 0x17a   : > { %v1009_v20 = vpop.permute.xlu1 %1008  ;;  %v1949_v33 = vpop.permute.xlu0 %972  ;;  %v1138_v4 = vsel %vm1049_vm2, %v1137_v11, %v1133_v61 }
 0x17b   : > { %v1167_v27 = vrot.slane %v1009_v20, %v1035_v6  ;;  %v1108_v24 = vrot.slane %v1949_v33, %v1061_v26 }
 0x17d   : > { %v1172_v31 = vsel %vm1042_vm1, %v1171_v15, %v1167_v27 }
 0x17e   : > { %v1940_v29 = vpop.permute.xlu1 %993  ;;  %v1954_v48 = vpop.permute.xlu0 %999  ;;  %v1177_v54 = vsel %vm1049_vm2, %v1176_v56, %v1172_v31 }
 0x17f   : > { %v1142_v36 = vrot.slane %v1940_v29, %v1054_v46  ;;  %v1109_v29 = vsel %vm1063_vm4, %v1108_v24, %v1104_v13  ;;  %v1182_v22 = vsel %vm1056_vm3, %v1181_v10, %v1177_v54 }
 0x181   : > { %v1143_v16 = vsel %vm1056_vm3, %v1142_v36, %v1138_v4 }
 0x182   : > { %v1944_v14 = vpop.permute.xlu1 %951  ;;  %v982_v43 = vpop.permute.xlu0 %981 }
 0x183   : > { %v1069_v20 = vrot.slane %v1944_v14, %v1068_v60  ;;  %v1123_v35 = vrot.slane %v982_v43, %v1971_v23 }
 0x186   : > { %v1946_v21 = vpop.permute.xlu1 %957  ;;  %v1024_v25 = vpop.permute.xlu0 %1023 }
 0x187   : > { %v1083_v6 = vrot.slane %v1946_v21, %v1971_v23  ;;  %v1191_v42 = vrot.slane %v1024_v25, %v1068_v60 }
 0x18a   : > { %v1951_v30 = vpop.permute.xlu1 %975  ;;  %v1027_v38 = vpop.permute.xlu0 %1026 }
 0x18b   : > { %v1113_v53 = vrot.slane %v1951_v30, %v1068_v60  ;;  %v1152_v30 = vrot.slane %v1954_v48, %v1068_v60  ;;  %v1076_v48 = vrot.slane %v1942_v8, %v1961_v59 }
 0x18d   : > { %v1114_v33 = vsel %vm1070_vm5, %v1113_v53, %v1109_v29 }
 0x18e   : > { %v997_v12 = vpop.permute.xlu1 %996 }
 0x18f   : > { %v1147_v62 = vrot.slane %v997_v12, %v1061_v26  ;;  %v1071_v12 = vsel %vm1070_vm5, %v1069_v20, %v1064_v28 }
 0x190   : > { %v1078_v21 = vsel %vm1077_vm6, %v1076_v48, %v1071_v12 }
 0x191   : > { %v1148_v34 = vsel %vm1063_vm4, %v1147_v62, %v1143_v16  ;;  %v1085_v50 = vsel %vm1084_vm7, %v1083_v6, %v1078_v21 }
 0x192   : > { %v979_v47 = vpop.permute.xlu1 %978  ;;  %v1153_v5 = vsel %vm1070_vm5, %v1152_v30, %v1148_v34 }
 0x193   : > { %v1118_v58 = vrot.slane %v979_v47, %v1961_v59  ;;  %v1196_v47 = vrot.slane %v1027_v38, %v1961_v59 }
 0x195   : > { %v1119_v14 = vsel %vm1077_vm6, %v1118_v58, %v1114_v33 }
 0x196   : > { %v1021_v57 = vpop.permute.xlu1 %1020  ;;  %v1124_v46 = vsel %vm1084_vm7, %v1123_v35, %v1119_v14 }
 0x197   : > { %v1186_v41 = vrot.slane %v1021_v57, %v1061_v26  ;;  %v1204_v27 = vsel %vm1203_vm8, %v1124_v46, %v1085_v50 }
 0x199   : > { %v1187_v37 = vsel %vm1063_vm4, %v1186_v41, %v1182_v22 }
 0x19a   : > { %v1003_v63 = vpop.permute.xlu1 %1002  ;;  %v1192_v51 = vsel %vm1070_vm5, %v1191_v42, %v1187_v37 }
 0x19b   : > { %v1157_v7 = vrot.slane %v1003_v63, %v1961_v59  ;;  %v1197_v43 = vsel %vm1077_vm6, %v1196_v47, %v1192_v51 }
 0x19d   : > { %v1158_v1 = vsel %vm1077_vm6, %v1157_v7, %v1153_v5 }
 0x19e   : > { %v1006_v17 = vpop.permute.xlu1 %1005 }
 0x19f   : > { %v1162_v39 = vrot.slane %v1006_v17, %v1971_v23 }
 0x1a1   : > { %v1163_v40 = vsel %vm1084_vm7, %v1162_v39, %v1158_v1 }
 0x1a2   : > { %v1030_v8 = vpop.permute.xlu1 %1029  ;;  %v1206_v55 = vsel %vm1205_vm9, %v1163_v40, %v1204_v27 }
 0x1a3   : > { %v1201_v26 = vrot.slane %v1030_v8, %v1971_v23 }
 0x1a5   : > { %v1202_v59 = vsel %vm1084_vm7, %v1201_v26, %v1197_v43 }
 0x1a6   : > { %v1208_v60 = vsel %vm1207_vm10, %v1202_v59, %v1206_v55 }
 0x1a7   : > { %1211 = vst.msk [vmem:[%s1656_s25 + $0x2] sm:$0xf] %vm1210_vm11, %v1208_v60 }
 0x1a8   : > { %1450 = shalt.err (!%p1447_p10)
}
 0x1a9   : > { %s1451_s25 = scalar_lea.hbm %s2024_s24, 128  ;;  %s1455_s30 = scalar_lea.hbm %s2063_s1, 256 }
 0x1aa   : > { %p1452_p2 = scmp.ne.s32.totalorder %s2024_s24, %s1451_s25  ;;  %p1456_p7 = scmp.lt.s32.totalorder %s2024_s24, %s2063_s1 }
 0x1ab   : > { %p1457_p0 = scmp.lt.s32.totalorder %s1455_s30, %s1451_s25 }
 0x1ac   : > { %p1453_p4 = pnand %p1452_p2, %p2074_p12 }
 0x1ad   : > { %p1458_p6 = por %p1457_p0, %p1456_p7 }
 0x1ae   : > { %p1454_p9 = pneg %p1453_p4 }
 0x1b0   : > { %p1459_p11 = pnand %p1458_p6, %p1454_p9 }
 0x1b2   : > { %1462 = shalt.err (!%p1459_p11)
}
 0x1b3   : > { %1328 = dma.vmem_to_hbm [thread:$0]  (%p2074_p12), %s1227_s20, 128, %s2024_s24, %s1213_s10  }
 0x1b4 PF: > { %s1238_s4 = sand.u32 1, %s1489_s6   ;;  %p2075_p13 = scmp.ne.s32.totalorder %s2069_s19, 0 }
 0x1b5   : > { %p2076_p1 = scmp.ge.s32.totalorder %s1501_s9, 2  ;;  %s1239_s5 = scalar_lea.sflag [#allocation4], %s1238_s4 }
 0x1b7   : > { %p1335_p3 = pnand %p2076_p1, %p2075_p13 }
 0x1b9   : > { %p1336_p5 = pneg %p1335_p3 }
 0x1bb   : > { %1484 = dma.done.wait (%p1336_p5), %s1239_s5, 128  }
 0x1bc   : > { %1486 = vsyncadd (%p1336_p5), %s1239_s5, 4294967168  ;;  %p14_p8 = scmp.ge.s32.totalorder %s1575_s12, 4   ;;  %s2077_s6 = smov %s1493_s7 }
 0x1bd   : > { %s2078_s7 = smov %s1497_s8  ;;  %s2079_s8 = smov %s1587_s15 }
 0x1be   : > { %s2080_s9 = smov %s1575_s12  ;;  %16 = sbr.rel (!%p14_p8) target bundleno = 5 (0x5), region = 69 }
 0x1c3   :  { %1244 = vsyncpa [#allocation3], 1 }
 0x1c4   :  { %1246 = vsyncpa [#allocation3 + $0x1], 1 }
 0x1c5   :  { %1247 = vsyncpa [#allocation4], 1 }
 0x1c6   :  { %1249 = vsyncpa [#allocation4 + $0x1], 1 }

</bundles_post_ra>
